<compile_context>
chip_gen: v5e
topology: v5e:2x2
jax: 0.10.0
libtpu: 0.0.40
codegen_flags: <defaults>
</compile_context>

<pallas_src>
import functools

import jax
import jax.numpy as jnp
from jax.experimental import pallas as pl
from jax.experimental.pallas import tpu as pltpu

CHUNK = 8  # rows per inner step = one f32 vreg's worth of sublanes


# ------------------------------ Pallas kernel -------------------------------

def _embed_ln_kernel(tok_ids_sm, seg_ids_sm, pos_ids_sm,      # SMEM flat ids
                     tok_tab_ref, seg_tab_ref, pos_tab_ref,   # VMEM tables (rows,1,D)
                     g_ref, b_ref,                            # (1, D) LN affine
                     o_ref,                                   # (tm, D) output tile
                     *, scale, eps, chunks):
    tm = o_ref.shape[0]
    base = pl.program_id(0) * tm                              # first row of this block

    gamma = g_ref[...].astype(jnp.float32)                    # hoisted out of the loop
    beta = b_ref[...].astype(jnp.float32)

    # Static unroll over 8-row chunks: store offsets stay static / tile-aligned.
    for c in range(chunks):
        row0 = c * CHUNK

        tok_rows, seg_rows, pos_rows = [], [], []
        for k in range(CHUNK):
            r = base + row0 + k                               # global (padded) row id
            tok_rows.append(tok_tab_ref[tok_ids_sm[r]])       # (1, D) gathered row
            seg_rows.append(seg_tab_ref[seg_ids_sm[r]])
            pos_rows.append(pos_tab_ref[pos_ids_sm[r]])
        tok = jnp.concatenate(tok_rows, axis=0).astype(jnp.float32)   # (8, D)
        seg = jnp.concatenate(seg_rows, axis=0).astype(jnp.float32)
        pos = jnp.concatenate(pos_rows, axis=0).astype(jnp.float32)

        # Fused: token_emb * scaling + segment_emb + position_emb   (f32 math)
        x = tok * scale + seg + pos

        # Single-pass LayerNorm statistics in f32: var = E[x^2] - mean^2.
        mean = jnp.mean(x, axis=-1, keepdims=True)
        var = jnp.maximum(jnp.mean(x * x, axis=-1, keepdims=True) - mean * mean, 0.0)
        y = (x - mean) * jax.lax.rsqrt(var + eps)
        y = y * gamma + beta

        # Full (8, D) unmasked store into this block's output tile.
        o_ref[pl.ds(row0, CHUNK), :] = y.astype(o_ref.dtype)
    # TODO(synk): nn.Dropout(p) is identity (eval mode); training-mode dropout
    # would use pltpu.prng_seed + pltpu.stateful_bernoulli on y before the store.


# --------------------------------- wrapper ----------------------------------

def transformer_embedding(params, token_sequence, segment_indices,
                          position_indices, *, eps=1e-5):
    """Pallas TPU equivalent of TransformerEmbedding.forward (eval mode).

    token_sequence / segment_indices / position_indices: [seq_len, batch] int32
    returns: [seq_len, batch, embed_dim] float32
    """
    S, B = token_sequence.shape
    V, D = params['tok_emb'].shape
    n_seg = params['seg_emb'].shape[0]
    n_pos = params['pos_emb'].shape[0]
    M = S * B
    scale = float(D) ** 0.5

    # Row-block size: multiple of CHUNK, capped at 128 rows (bounded unroll,
    # tiny resident footprint even on v7x's 64 MiB VMEM), and small enough that
    # the 'parallel' grid axis has >=2 blocks whenever M allows (v7x megacore).
    tm = max(CHUNK, min(128, (M // (2 * CHUNK)) * CHUNK))
    m_pad = pl.cdiv(M, tm) * tm
    chunks = tm // CHUNK

    def flat_pad(idx):
        f = idx.reshape(M).astype(jnp.int32)
        return jnp.pad(f, (0, m_pad - M))          # padded rows gather table row 0

    tok_ids = flat_pad(token_sequence)             # seq-major rows: row = s*B + b
    seg_ids = flat_pad(segment_indices)
    pos_ids = flat_pad(position_indices)

    # Tables as (rows, 1, D): the dynamic gather index lives on the leading
    # (untiled) axis; last-two block dims equal the full array dims, so no
    # (8, 128) constraint issues.  Constant index_map -> VMEM-resident.
    tok_tab = params['tok_emb'][:, None, :]
    seg_tab = params['seg_emb'][:, None, :]
    pos_tab = params['pos_emb'][:, None, :]
    g = params['ln_g'].reshape(1, D)
    b = params['ln_b'].reshape(1, D)

    # index_maps receive (grid indices..., *scalar_prefetch_refs).
    def const_tab(i, *sm): return (0, 0, 0)
    def const_vec(i, *sm): return (0, 0)
    def out_map(i, *sm): return (i, 0)

    grid_spec = pltpu.PrefetchScalarGridSpec(
        num_scalar_prefetch=3,
        grid=(m_pad // tm,),
        in_specs=[
            pl.BlockSpec((V, 1, D), const_tab),
            pl.BlockSpec((n_seg, 1, D), const_tab),
            pl.BlockSpec((n_pos, 1, D), const_tab),
            pl.BlockSpec((1, D), const_vec),
            pl.BlockSpec((1, D), const_vec),
        ],
        out_specs=pl.BlockSpec((tm, D), out_map),
    )

    # Advisory cost hint for XLA scheduling around the (memory-bound) kernel.
    bytes_accessed = (4 * D * (V + n_seg + n_pos)   # tables read once
                      + 4 * 3 * m_pad               # id arrays
                      + 4 * m_pad * D)              # output writeback
    cost = pl.CostEstimate(flops=8 * m_pad * D,
                           transcendentals=m_pad,
                           bytes_accessed=bytes_accessed)

    out = pl.pallas_call(
        functools.partial(_embed_ln_kernel, scale=scale, eps=eps, chunks=chunks),
        out_shape=jax.ShapeDtypeStruct((m_pad, D), jnp.float32),
        grid_spec=grid_spec,
        compiler_params=pltpu.CompilerParams(
            dimension_semantics=("parallel",),
            vmem_limit_bytes=32 * 1024 * 1024,
        ),
        cost_estimate=cost,
    )(tok_ids, seg_ids, pos_ids, tok_tab, seg_tab, pos_tab, g, b)

    return out[:M].reshape(S, B, D)


# -------------------------------- parameters --------------------------------

def init_params(key, *, embed_dim, vocab_size, n_positions, n_segments=3,
                padding_idx=0):
    std = 0.02
    k1, k2, k3 = jax.random.split(key, 3)

    def emb(k, n):
        t = jax.random.normal(k, (n, embed_dim), jnp.float32) * std
        return t.at[padding_idx].set(0.0)      # nn.Embedding(padding_idx=...) init

    return {
        'tok_emb': emb(k1, vocab_size),
        'seg_emb': emb(k2, n_segments),
        'pos_emb': emb(k3, n_positions),
        'ln_g': jnp.ones((embed_dim,), jnp.float32),
        'ln_b': jnp.zeros((embed_dim,), jnp.float32),
    }


def _reference(params, tok, seg, pos, eps=1e-5):
    D = params['tok_emb'].shape[-1]
    x = (jnp.take(params['tok_emb'], tok, axis=0) * (float(D) ** 0.5)
         + jnp.take(params['seg_emb'], seg, axis=0)
         + jnp.take(params['pos_emb'], pos, axis=0))
    mean = jnp.mean(x, axis=-1, keepdims=True)
    var = jnp.mean((x - mean) ** 2, axis=-1, keepdims=True)
    return (x - mean) * jax.lax.rsqrt(var + eps) * params['ln_g'] + params['ln_b']


# ----------------------------------- main ------------------------------------

if __name__ == "__main__":
    cfg = dict(embed_dim=128, vocab_size=128, n_positions=16, n_segments=3,
               padding_idx=0)
    S, B = 8, 2                                    # [seq_len, batch] layout

    key = jax.random.PRNGKey(0)
    pk, tk = jax.random.split(key)
    params = init_params(pk, **cfg)

    tokens = jax.random.randint(tk, (S, B), 1, cfg['vocab_size'], dtype=jnp.int32)
    segs = jnp.full((S, B), 1, dtype=jnp.int32)
    poss = jnp.broadcast_to(jnp.arange(S, dtype=jnp.int32)[:, None], (S, B))

    out = transformer_embedding(params, tokens, segs, poss)
    out = jax.block_until_ready(out)

    ref = _reference(params, tokens, segs, poss)
    assert out.shape == (S, B, cfg['embed_dim'])
    assert bool(jnp.all(jnp.isfinite(out)))
    assert bool(jnp.allclose(out, ref, atol=1e-4, rtol=1e-4))
    print("KERNEL_OK")
</pallas_src>

<mosaic_0001>
module attributes {stable_mosaic.version = 11 : i64} {
  func.func @_embed_ln_kernel(%arg0: i32, %arg1: memref<16xi32, #tpu.memory_space<smem>>, %arg2: memref<16xi32, #tpu.memory_space<smem>>, %arg3: memref<16xi32, #tpu.memory_space<smem>>, %arg4: memref<128x1x128xf32, #tpu.memory_space<vmem>>, %arg5: memref<3x1x128xf32, #tpu.memory_space<vmem>>, %arg6: memref<16x1x128xf32, #tpu.memory_space<vmem>>, %arg7: memref<1x128xf32, #tpu.memory_space<vmem>>, %arg8: memref<1x128xf32, #tpu.memory_space<vmem>>, %arg9: memref<8x128xf32, #tpu.memory_space<vmem>>) attributes {dimension_semantics = [#tpu.dimension_semantics<parallel>], iteration_bounds = array<i64: 2>, scalar_prefetch = 3 : i64, scratch_operands = 0 : i64, tpu.core_type = #tpu.core_type<tc>, window_params = [{pipeline_mode = #tpu.pipeline_mode<synchronous>, transform_indices = @transform_0, window_bounds = array<i64: 128, 1, 128>}, {pipeline_mode = #tpu.pipeline_mode<synchronous>, transform_indices = @transform_1, window_bounds = array<i64: 3, 1, 128>}, {pipeline_mode = #tpu.pipeline_mode<synchronous>, transform_indices = @transform_2, window_bounds = array<i64: 16, 1, 128>}, {pipeline_mode = #tpu.pipeline_mode<synchronous>, transform_indices = @transform_3, window_bounds = array<i64: 1, 128>}, {pipeline_mode = #tpu.pipeline_mode<synchronous>, transform_indices = @transform_4, window_bounds = array<i64: 1, 128>}, {transform_indices = @transform_5, window_bounds = array<i64: 8, 128>}]} {
    %c8_i32 = arith.constant 8 : i32
    %0 = arith.muli %arg0, %c8_i32 : i32
    %c0 = arith.constant 0 : index
    %c0_0 = arith.constant 0 : index
    %1 = vector.load %arg7[%c0, %c0_0] : memref<1x128xf32, #tpu.memory_space<vmem>>, vector<1x128xf32>
    %c0_1 = arith.constant 0 : index
    %c0_2 = arith.constant 0 : index
    %2 = vector.load %arg8[%c0_1, %c0_2] : memref<1x128xf32, #tpu.memory_space<vmem>>, vector<1x128xf32>
    %c0_i32 = arith.constant 0 : i32
    %3 = arith.addi %0, %c0_i32 : i32
    %c0_i32_3 = arith.constant 0 : i32
    %4 = arith.addi %3, %c0_i32_3 : i32
    %5 = arith.index_cast %4 : i32 to index
    %6 = memref.load %arg1[%5] : memref<16xi32, #tpu.memory_space<smem>>
    %7 = arith.index_cast %6 : i32 to index
    %c0_4 = arith.constant 0 : index
    %c0_5 = arith.constant 0 : index
    %8 = vector.load %arg4[%7, %c0_4, %c0_5] : memref<128x1x128xf32, #tpu.memory_space<vmem>>, vector<1x1x128xf32>
    %9 = vector.shape_cast %8 : vector<1x1x128xf32> to vector<1x128xf32>
    %10 = arith.index_cast %4 : i32 to index
    %11 = memref.load %arg2[%10] : memref<16xi32, #tpu.memory_space<smem>>
    %12 = arith.index_cast %11 : i32 to index
    %c0_6 = arith.constant 0 : index
    %c0_7 = arith.constant 0 : index
    %13 = vector.load %arg5[%12, %c0_6, %c0_7] : memref<3x1x128xf32, #tpu.memory_space<vmem>>, vector<1x1x128xf32>
    %14 = vector.shape_cast %13 : vector<1x1x128xf32> to vector<1x128xf32>
    %15 = arith.index_cast %4 : i32 to index
    %16 = memref.load %arg3[%15] : memref<16xi32, #tpu.memory_space<smem>>
    %17 = arith.index_cast %16 : i32 to index
    %c0_8 = arith.constant 0 : index
    %c0_9 = arith.constant 0 : index
    %18 = vector.load %arg6[%17, %c0_8, %c0_9] : memref<16x1x128xf32, #tpu.memory_space<vmem>>, vector<1x1x128xf32>
    %19 = vector.shape_cast %18 : vector<1x1x128xf32> to vector<1x128xf32>
    %c0_i32_10 = arith.constant 0 : i32
    %20 = arith.addi %0, %c0_i32_10 : i32
    %c1_i32 = arith.constant 1 : i32
    %21 = arith.addi %20, %c1_i32 : i32
    %22 = arith.index_cast %21 : i32 to index
    %23 = memref.load %arg1[%22] : memref<16xi32, #tpu.memory_space<smem>>
    %24 = arith.index_cast %23 : i32 to index
    %c0_11 = arith.constant 0 : index
    %c0_12 = arith.constant 0 : index
    %25 = vector.load %arg4[%24, %c0_11, %c0_12] : memref<128x1x128xf32, #tpu.memory_space<vmem>>, vector<1x1x128xf32>
    %26 = vector.shape_cast %25 : vector<1x1x128xf32> to vector<1x128xf32>
    %27 = arith.index_cast %21 : i32 to index
    %28 = memref.load %arg2[%27] : memref<16xi32, #tpu.memory_space<smem>>
    %29 = arith.index_cast %28 : i32 to index
    %c0_13 = arith.constant 0 : index
    %c0_14 = arith.constant 0 : index
    %30 = vector.load %arg5[%29, %c0_13, %c0_14] : memref<3x1x128xf32, #tpu.memory_space<vmem>>, vector<1x1x128xf32>
    %31 = vector.shape_cast %30 : vector<1x1x128xf32> to vector<1x128xf32>
    %32 = arith.index_cast %21 : i32 to index
    %33 = memref.load %arg3[%32] : memref<16xi32, #tpu.memory_space<smem>>
    %34 = arith.index_cast %33 : i32 to index
    %c0_15 = arith.constant 0 : index
    %c0_16 = arith.constant 0 : index
    %35 = vector.load %arg6[%34, %c0_15, %c0_16] : memref<16x1x128xf32, #tpu.memory_space<vmem>>, vector<1x1x128xf32>
    %36 = vector.shape_cast %35 : vector<1x1x128xf32> to vector<1x128xf32>
    %c0_i32_17 = arith.constant 0 : i32
    %37 = arith.addi %0, %c0_i32_17 : i32
    %c2_i32 = arith.constant 2 : i32
    %38 = arith.addi %37, %c2_i32 : i32
    %39 = arith.index_cast %38 : i32 to index
    %40 = memref.load %arg1[%39] : memref<16xi32, #tpu.memory_space<smem>>
    %41 = arith.index_cast %40 : i32 to index
    %c0_18 = arith.constant 0 : index
    %c0_19 = arith.constant 0 : index
    %42 = vector.load %arg4[%41, %c0_18, %c0_19] : memref<128x1x128xf32, #tpu.memory_space<vmem>>, vector<1x1x128xf32>
    %43 = vector.shape_cast %42 : vector<1x1x128xf32> to vector<1x128xf32>
    %44 = arith.index_cast %38 : i32 to index
    %45 = memref.load %arg2[%44] : memref<16xi32, #tpu.memory_space<smem>>
    %46 = arith.index_cast %45 : i32 to index
    %c0_20 = arith.constant 0 : index
    %c0_21 = arith.constant 0 : index
    %47 = vector.load %arg5[%46, %c0_20, %c0_21] : memref<3x1x128xf32, #tpu.memory_space<vmem>>, vector<1x1x128xf32>
    %48 = vector.shape_cast %47 : vector<1x1x128xf32> to vector<1x128xf32>
    %49 = arith.index_cast %38 : i32 to index
    %50 = memref.load %arg3[%49] : memref<16xi32, #tpu.memory_space<smem>>
    %51 = arith.index_cast %50 : i32 to index
    %c0_22 = arith.constant 0 : index
    %c0_23 = arith.constant 0 : index
    %52 = vector.load %arg6[%51, %c0_22, %c0_23] : memref<16x1x128xf32, #tpu.memory_space<vmem>>, vector<1x1x128xf32>
    %53 = vector.shape_cast %52 : vector<1x1x128xf32> to vector<1x128xf32>
    %c0_i32_24 = arith.constant 0 : i32
    %54 = arith.addi %0, %c0_i32_24 : i32
    %c3_i32 = arith.constant 3 : i32
    %55 = arith.addi %54, %c3_i32 : i32
    %56 = arith.index_cast %55 : i32 to index
    %57 = memref.load %arg1[%56] : memref<16xi32, #tpu.memory_space<smem>>
    %58 = arith.index_cast %57 : i32 to index
    %c0_25 = arith.constant 0 : index
    %c0_26 = arith.constant 0 : index
    %59 = vector.load %arg4[%58, %c0_25, %c0_26] : memref<128x1x128xf32, #tpu.memory_space<vmem>>, vector<1x1x128xf32>
    %60 = vector.shape_cast %59 : vector<1x1x128xf32> to vector<1x128xf32>
    %61 = arith.index_cast %55 : i32 to index
    %62 = memref.load %arg2[%61] : memref<16xi32, #tpu.memory_space<smem>>
    %63 = arith.index_cast %62 : i32 to index
    %c0_27 = arith.constant 0 : index
    %c0_28 = arith.constant 0 : index
    %64 = vector.load %arg5[%63, %c0_27, %c0_28] : memref<3x1x128xf32, #tpu.memory_space<vmem>>, vector<1x1x128xf32>
    %65 = vector.shape_cast %64 : vector<1x1x128xf32> to vector<1x128xf32>
    %66 = arith.index_cast %55 : i32 to index
    %67 = memref.load %arg3[%66] : memref<16xi32, #tpu.memory_space<smem>>
    %68 = arith.index_cast %67 : i32 to index
    %c0_29 = arith.constant 0 : index
    %c0_30 = arith.constant 0 : index
    %69 = vector.load %arg6[%68, %c0_29, %c0_30] : memref<16x1x128xf32, #tpu.memory_space<vmem>>, vector<1x1x128xf32>
    %70 = vector.shape_cast %69 : vector<1x1x128xf32> to vector<1x128xf32>
    %c0_i32_31 = arith.constant 0 : i32
    %71 = arith.addi %0, %c0_i32_31 : i32
    %c4_i32 = arith.constant 4 : i32
    %72 = arith.addi %71, %c4_i32 : i32
    %73 = arith.index_cast %72 : i32 to index
    %74 = memref.load %arg1[%73] : memref<16xi32, #tpu.memory_space<smem>>
    %75 = arith.index_cast %74 : i32 to index
    %c0_32 = arith.constant 0 : index
    %c0_33 = arith.constant 0 : index
    %76 = vector.load %arg4[%75, %c0_32, %c0_33] : memref<128x1x128xf32, #tpu.memory_space<vmem>>, vector<1x1x128xf32>
    %77 = vector.shape_cast %76 : vector<1x1x128xf32> to vector<1x128xf32>
    %78 = arith.index_cast %72 : i32 to index
    %79 = memref.load %arg2[%78] : memref<16xi32, #tpu.memory_space<smem>>
    %80 = arith.index_cast %79 : i32 to index
    %c0_34 = arith.constant 0 : index
    %c0_35 = arith.constant 0 : index
    %81 = vector.load %arg5[%80, %c0_34, %c0_35] : memref<3x1x128xf32, #tpu.memory_space<vmem>>, vector<1x1x128xf32>
    %82 = vector.shape_cast %81 : vector<1x1x128xf32> to vector<1x128xf32>
    %83 = arith.index_cast %72 : i32 to index
    %84 = memref.load %arg3[%83] : memref<16xi32, #tpu.memory_space<smem>>
    %85 = arith.index_cast %84 : i32 to index
    %c0_36 = arith.constant 0 : index
    %c0_37 = arith.constant 0 : index
    %86 = vector.load %arg6[%85, %c0_36, %c0_37] : memref<16x1x128xf32, #tpu.memory_space<vmem>>, vector<1x1x128xf32>
    %87 = vector.shape_cast %86 : vector<1x1x128xf32> to vector<1x128xf32>
    %c0_i32_38 = arith.constant 0 : i32
    %88 = arith.addi %0, %c0_i32_38 : i32
    %c5_i32 = arith.constant 5 : i32
    %89 = arith.addi %88, %c5_i32 : i32
    %90 = arith.index_cast %89 : i32 to index
    %91 = memref.load %arg1[%90] : memref<16xi32, #tpu.memory_space<smem>>
    %92 = arith.index_cast %91 : i32 to index
    %c0_39 = arith.constant 0 : index
    %c0_40 = arith.constant 0 : index
    %93 = vector.load %arg4[%92, %c0_39, %c0_40] : memref<128x1x128xf32, #tpu.memory_space<vmem>>, vector<1x1x128xf32>
    %94 = vector.shape_cast %93 : vector<1x1x128xf32> to vector<1x128xf32>
    %95 = arith.index_cast %89 : i32 to index
    %96 = memref.load %arg2[%95] : memref<16xi32, #tpu.memory_space<smem>>
    %97 = arith.index_cast %96 : i32 to index
    %c0_41 = arith.constant 0 : index
    %c0_42 = arith.constant 0 : index
    %98 = vector.load %arg5[%97, %c0_41, %c0_42] : memref<3x1x128xf32, #tpu.memory_space<vmem>>, vector<1x1x128xf32>
    %99 = vector.shape_cast %98 : vector<1x1x128xf32> to vector<1x128xf32>
    %100 = arith.index_cast %89 : i32 to index
    %101 = memref.load %arg3[%100] : memref<16xi32, #tpu.memory_space<smem>>
    %102 = arith.index_cast %101 : i32 to index
    %c0_43 = arith.constant 0 : index
    %c0_44 = arith.constant 0 : index
    %103 = vector.load %arg6[%102, %c0_43, %c0_44] : memref<16x1x128xf32, #tpu.memory_space<vmem>>, vector<1x1x128xf32>
    %104 = vector.shape_cast %103 : vector<1x1x128xf32> to vector<1x128xf32>
    %c0_i32_45 = arith.constant 0 : i32
    %105 = arith.addi %0, %c0_i32_45 : i32
    %c6_i32 = arith.constant 6 : i32
    %106 = arith.addi %105, %c6_i32 : i32
    %107 = arith.index_cast %106 : i32 to index
    %108 = memref.load %arg1[%107] : memref<16xi32, #tpu.memory_space<smem>>
    %109 = arith.index_cast %108 : i32 to index
    %c0_46 = arith.constant 0 : index
    %c0_47 = arith.constant 0 : index
    %110 = vector.load %arg4[%109, %c0_46, %c0_47] : memref<128x1x128xf32, #tpu.memory_space<vmem>>, vector<1x1x128xf32>
    %111 = vector.shape_cast %110 : vector<1x1x128xf32> to vector<1x128xf32>
    %112 = arith.index_cast %106 : i32 to index
    %113 = memref.load %arg2[%112] : memref<16xi32, #tpu.memory_space<smem>>
    %114 = arith.index_cast %113 : i32 to index
    %c0_48 = arith.constant 0 : index
    %c0_49 = arith.constant 0 : index
    %115 = vector.load %arg5[%114, %c0_48, %c0_49] : memref<3x1x128xf32, #tpu.memory_space<vmem>>, vector<1x1x128xf32>
    %116 = vector.shape_cast %115 : vector<1x1x128xf32> to vector<1x128xf32>
    %117 = arith.index_cast %106 : i32 to index
    %118 = memref.load %arg3[%117] : memref<16xi32, #tpu.memory_space<smem>>
    %119 = arith.index_cast %118 : i32 to index
    %c0_50 = arith.constant 0 : index
    %c0_51 = arith.constant 0 : index
    %120 = vector.load %arg6[%119, %c0_50, %c0_51] : memref<16x1x128xf32, #tpu.memory_space<vmem>>, vector<1x1x128xf32>
    %121 = vector.shape_cast %120 : vector<1x1x128xf32> to vector<1x128xf32>
    %c0_i32_52 = arith.constant 0 : i32
    %122 = arith.addi %0, %c0_i32_52 : i32
    %c7_i32 = arith.constant 7 : i32
    %123 = arith.addi %122, %c7_i32 : i32
    %124 = arith.index_cast %123 : i32 to index
    %125 = memref.load %arg1[%124] : memref<16xi32, #tpu.memory_space<smem>>
    %126 = arith.index_cast %125 : i32 to index
    %c0_53 = arith.constant 0 : index
    %c0_54 = arith.constant 0 : index
    %127 = vector.load %arg4[%126, %c0_53, %c0_54] : memref<128x1x128xf32, #tpu.memory_space<vmem>>, vector<1x1x128xf32>
    %128 = vector.shape_cast %127 : vector<1x1x128xf32> to vector<1x128xf32>
    %129 = arith.index_cast %123 : i32 to index
    %130 = memref.load %arg2[%129] : memref<16xi32, #tpu.memory_space<smem>>
    %131 = arith.index_cast %130 : i32 to index
    %c0_55 = arith.constant 0 : index
    %c0_56 = arith.constant 0 : index
    %132 = vector.load %arg5[%131, %c0_55, %c0_56] : memref<3x1x128xf32, #tpu.memory_space<vmem>>, vector<1x1x128xf32>
    %133 = vector.shape_cast %132 : vector<1x1x128xf32> to vector<1x128xf32>
    %134 = arith.index_cast %123 : i32 to index
    %135 = memref.load %arg3[%134] : memref<16xi32, #tpu.memory_space<smem>>
    %136 = arith.index_cast %135 : i32 to index
    %c0_57 = arith.constant 0 : index
    %c0_58 = arith.constant 0 : index
    %137 = vector.load %arg6[%136, %c0_57, %c0_58] : memref<16x1x128xf32, #tpu.memory_space<vmem>>, vector<1x1x128xf32>
    %138 = vector.shape_cast %137 : vector<1x1x128xf32> to vector<1x128xf32>
    %139 = tpu.concatenate %9, %26, %43, %60, %77, %94, %111, %128 in 0 : vector<1x128xf32>, vector<1x128xf32>, vector<1x128xf32>, vector<1x128xf32>, vector<1x128xf32>, vector<1x128xf32>, vector<1x128xf32>, vector<1x128xf32> -> vector<8x128xf32>
    %140 = tpu.concatenate %14, %31, %48, %65, %82, %99, %116, %133 in 0 : vector<1x128xf32>, vector<1x128xf32>, vector<1x128xf32>, vector<1x128xf32>, vector<1x128xf32>, vector<1x128xf32>, vector<1x128xf32>, vector<1x128xf32> -> vector<8x128xf32>
    %141 = tpu.concatenate %19, %36, %53, %70, %87, %104, %121, %138 in 0 : vector<1x128xf32>, vector<1x128xf32>, vector<1x128xf32>, vector<1x128xf32>, vector<1x128xf32>, vector<1x128xf32>, vector<1x128xf32>, vector<1x128xf32> -> vector<8x128xf32>
    %cst = arith.constant 11.3137083 : f32
    %142 = vector.broadcast %cst : f32 to vector<8x128xf32>
    %143 = arith.mulf %139, %142 : vector<8x128xf32>
    %144 = arith.addf %143, %140 : vector<8x128xf32>
    %145 = arith.addf %144, %141 : vector<8x128xf32>
    %cst_59 = arith.constant dense<0.000000e+00> : vector<8xf32>
    %146 = vector.multi_reduction <add>, %145, %cst_59 [1] : vector<8x128xf32> to vector<8xf32>
    %147 = vector.shape_cast %146 : vector<8xf32> to vector<8x1xf32>
    %cst_60 = arith.constant 1.280000e+02 : f32
    %148 = vector.broadcast %cst_60 : f32 to vector<8x1xf32>
    %149 = arith.divf %147, %148 : vector<8x1xf32>
    %150 = arith.mulf %145, %145 : vector<8x128xf32>
    %cst_61 = arith.constant dense<0.000000e+00> : vector<8xf32>
    %151 = vector.multi_reduction <add>, %150, %cst_61 [1] : vector<8x128xf32> to vector<8xf32>
    %152 = vector.shape_cast %151 : vector<8xf32> to vector<8x1xf32>
    %cst_62 = arith.constant 1.280000e+02 : f32
    %153 = vector.broadcast %cst_62 : f32 to vector<8x1xf32>
    %154 = arith.divf %152, %153 : vector<8x1xf32>
    %155 = arith.mulf %149, %149 : vector<8x1xf32>
    %156 = arith.subf %154, %155 : vector<8x1xf32>
    %cst_63 = arith.constant 0.000000e+00 : f32
    %157 = vector.broadcast %cst_63 : f32 to vector<8x1xf32>
    %158 = arith.maximumf %156, %157 : vector<8x1xf32>
    %159 = vector.broadcast %149 : vector<8x1xf32> to vector<8x128xf32>
    %160 = arith.subf %145, %159 : vector<8x128xf32>
    %cst_64 = arith.constant 9.99999974E-6 : f32
    %161 = vector.broadcast %cst_64 : f32 to vector<8x1xf32>
    %162 = arith.addf %158, %161 : vector<8x1xf32>
    %163 = math.rsqrt %162 : vector<8x1xf32>
    %164 = vector.broadcast %163 : vector<8x1xf32> to vector<8x128xf32>
    %165 = arith.mulf %160, %164 : vector<8x128xf32>
    %166 = vector.broadcast %1 : vector<1x128xf32> to vector<8x128xf32>
    %167 = arith.mulf %165, %166 : vector<8x128xf32>
    %168 = vector.broadcast %2 : vector<1x128xf32> to vector<8x128xf32>
    %169 = arith.addf %167, %168 : vector<8x128xf32>
    %c0_65 = arith.constant 0 : index
    %c0_66 = arith.constant 0 : index
    %170 = vector.load %arg9[%c0_65, %c0_66] : memref<8x128xf32, #tpu.memory_space<vmem>>, vector<8x128xf32>
    tpu.vector_store %arg9[%c0_65, %c0_66], %169 {strides = array<i32>} : memref<8x128xf32, #tpu.memory_space<vmem>>, vector<8x128xf32>,
    return
  }
  func.func @transform_0(%arg0: i32, %arg1: memref<16xi32, #tpu.memory_space<smem>>, %arg2: memref<16xi32, #tpu.memory_space<smem>>, %arg3: memref<16xi32, #tpu.memory_space<smem>>) -> (i32, i32, i32) {
    %c0_i32 = arith.constant 0 : i32
    %c0_i32_0 = arith.constant 0 : i32
    %c0_i32_1 = arith.constant 0 : i32
    %c0_i32_2 = arith.constant 0 : i32
    return %c0_i32, %c0_i32_0, %c0_i32_1 : i32, i32, i32
  }
  func.func @transform_1(%arg0: i32, %arg1: memref<16xi32, #tpu.memory_space<smem>>, %arg2: memref<16xi32, #tpu.memory_space<smem>>, %arg3: memref<16xi32, #tpu.memory_space<smem>>) -> (i32, i32, i32) {
    %c0_i32 = arith.constant 0 : i32
    %c0_i32_0 = arith.constant 0 : i32
    %c0_i32_1 = arith.constant 0 : i32
    %c0_i32_2 = arith.constant 0 : i32
    return %c0_i32, %c0_i32_0, %c0_i32_1 : i32, i32, i32
  }
  func.func @transform_2(%arg0: i32, %arg1: memref<16xi32, #tpu.memory_space<smem>>, %arg2: memref<16xi32, #tpu.memory_space<smem>>, %arg3: memref<16xi32, #tpu.memory_space<smem>>) -> (i32, i32, i32) {
    %c0_i32 = arith.constant 0 : i32
    %c0_i32_0 = arith.constant 0 : i32
    %c0_i32_1 = arith.constant 0 : i32
    %c0_i32_2 = arith.constant 0 : i32
    return %c0_i32, %c0_i32_0, %c0_i32_1 : i32, i32, i32
  }
  func.func @transform_3(%arg0: i32, %arg1: memref<16xi32, #tpu.memory_space<smem>>, %arg2: memref<16xi32, #tpu.memory_space<smem>>, %arg3: memref<16xi32, #tpu.memory_space<smem>>) -> (i32, i32) {
    %c0_i32 = arith.constant 0 : i32
    %c0_i32_0 = arith.constant 0 : i32
    %c0_i32_1 = arith.constant 0 : i32
    return %c0_i32, %c0_i32_0 : i32, i32
  }
  func.func @transform_4(%arg0: i32, %arg1: memref<16xi32, #tpu.memory_space<smem>>, %arg2: memref<16xi32, #tpu.memory_space<smem>>, %arg3: memref<16xi32, #tpu.memory_space<smem>>) -> (i32, i32) {
    %c0_i32 = arith.constant 0 : i32
    %c0_i32_0 = arith.constant 0 : i32
    %c0_i32_1 = arith.constant 0 : i32
    return %c0_i32, %c0_i32_0 : i32, i32
  }
  func.func @transform_5(%arg0: i32, %arg1: memref<16xi32, #tpu.memory_space<smem>>, %arg2: memref<16xi32, #tpu.memory_space<smem>>, %arg3: memref<16xi32, #tpu.memory_space<smem>>) -> (i32, i32) {
    %c0_i32 = arith.constant 0 : i32
    %c0_i32_0 = arith.constant 0 : i32
    return %arg0, %c0_i32 : i32, i32
  }
}

</mosaic_0001>

<bundles_post_ra>
// kernel: tpu_custom_call.1
= control target key start
LH: loop header
LB: loop body
LE: loop exit
PB: predicated region body
PF: predicated region fallthrough
CT: control target
= control target key end

     0   :  { %s858_s11 = smov [#allocation3]   ;;  %s859_s12 = smov [#allocation4]   ;;  %s1128_s0 = inlined_call_operand.hbm [shape: s32[16], index: 0, kind: input, shape index: {}]   ;;  %s1129_s3 = inlined_call_operand.hbm [shape: f32[128,1,128], index: 3, kind: input, shape index: {}]   ;;  %s1130_s4 = inlined_call_operand.vmem [shape: f32[3,1,128], index: 4, kind: input, shape index: {}]   ;;  %s1131_s5 = inlined_call_operand.hbm [shape: f32[16,1,128], index: 5, kind: input, shape index: {}]   ;;  %s1132_s6 = inlined_call_operand.vmem [shape: f32[1,128], index: 6, kind: input, shape index: {}]   ;;  %s1133_s7 = inlined_call_operand.vmem [shape: f32[1,128], index: 7, kind: input, shape index: {}]   ;;  %s1134_s8 = inlined_call_operand.hbm [shape: f32[16,128], index: 8, kind: output, shape index: {}]   ;;  %s1135_s1 = inlined_call_operand.hbm [shape: s32[16], index: 1, kind: input, shape index: {}]   ;;  %s1136_s2 = inlined_call_operand.hbm [shape: s32[16], index: 2, kind: input, shape index: {}]  }
   0x1   :  { %1143 = sst [smem:[#allocation22_spill]] %s1129_s3  ;;  %s14_s29 = sshll.u32 %s1128_s0, 4  ;;  %s15_s29 = int_to_ptr.hbm [resolvable:$true] %s14_s29 }
   0x2   :  { %1144 = sst [smem:[#allocation23_spill]] %s1131_s5  ;;  %s19_s10 = sshll.u32 %s1135_s1, 4  ;;  %s20_s10 = int_to_ptr.hbm [resolvable:$true] %s19_s10 }
   0x3   :  { %1145 = sst [smem:[#allocation24_spill]] %s1133_s7  ;;  %s24_s15 = sshll.u32 %s1136_s2, 4  ;;  %s25_s15 = int_to_ptr.hbm [resolvable:$true] %s24_s15 }
   0x4   :  { %17 = dma.hbm_to_smem %s15_s29, 16, %s858_s11, [#allocation2] }
   0x5   :  { %22 = dma.hbm_to_smem %s20_s10, 16, %s859_s12, [#allocation2] }
   0x6   :  { %s860_s16 = smov [#allocation5]  }
   0x7   :  { %27 = dma.hbm_to_smem %s25_s15, 16, %s860_s16, [#allocation2] }
   0x8   :  { %828 = dma.done.wait [#allocation2], 48 }
   0x9   :  { %829 = vsyncadd [#allocation2], 4294967248 }
   0xa   :  { %30 = sfence }
   0xb   :  { %31 = vsyncpa [#allocation7], 0 }
   0xc   :  { %32 = vsyncpa [#allocation10], 0 }
   0xd   :  { %33 = vsyncpa [#allocation8], 0 }
   0xe   :  { %35 = vsyncpa [#allocation8 + $0x1], 0  ;;  %s920_s0 = smov 0   ;;  %s922_s1 = smov 0  }
   0xf   :  { %s924_s17 = smov 0   ;;  %s926_s18 = smov 0  }
  0x10 LB: > { %1146 = sst [smem:[#allocation16_spill]] %s844_s0  ;;  %s941_s2 = sadd.s32 4294967295, %s856_s18   ;;  %s856_s18 = sphi %s926_s18, %s1161_s18   ;;  %s852_s17 = sphi %s924_s17, %s1163_s17   ;;  %s848_s1 = sphi %s922_s1, %s1165_s1   ;;  %s844_s0 = sphi %s920_s0, %s1164_s0  }
  0x11   : > { %1147 = sst [smem:[#allocation17_spill]] %s852_s17  ;;  %s582_s19 = sadd.s32 4294967294, %s856_s18  }
  0x12   : > { %1148 = sst [smem:[#allocation18_spill]] %s856_s18  ;;  %s945_s20 = sadd.s32 1, %s856_s18  }
  0x13   : > { %1149 = sst [smem:[#allocation19_spill]] %s945_s20  ;;  %s153_s21 = sadd.s32 1, %s852_s17 }
  0x14   : > { %s150_s22 = ssub.s32 %s856_s18, %s945_s20  ;;  %p163_p0 = scmp.ne.s32.totalorder %s852_s17, %s848_s1 }
  0x15   : > { %p151_p1 = scmp.eq.s32.totalorder %s150_s22, 0  ;;  %p164_p2 = scmp.eq.s32.totalorder %s941_s2, 1 }
  0x16   : > { %p169_p3 = scmp.ne.s32.totalorder %s848_s1, %s844_s0  ;;  %p170_p4 = scmp.eq.s32.totalorder %s582_s19, 1 }
  0x17   : > { %s956_s23 = scalar_select %p151_p1, %s852_s17, %s153_s21  }
  0x18   : > { %p958_p5 = por %p164_p2, %p163_p0  ;;  %p962_p6 = por %p170_p4, %p169_p3 }
  0x19   : > { %1150 = sst [smem:[#allocation20_spill]] %s956_s23  ;;  %p583_p7 = scmp.ge.s32.totalorder %s856_s18, 1 }
  0x1a   : > { %s1152_s25 = scalar_select %p962_p6, 1, 0 }
  0x1b   : > { %p177_p8 = scmp.lt.s32.totalorder %s856_s18, 3  ;;  %p616_p9 = scmp.eq.s32.totalorder %s941_s2, 0 }
  0x1c   : > { %1153 = sst [smem:[#allocation21_spill]] %s1152_s25  ;;  %s861_s30 = smov [#allocation6]  }
  0x1d   : > { %p969_p10 = pnand %p583_p7, %p177_p8  ;;  %s1155_s3 = sld [smem:[#allocation22_spill]] }
  0x1e   : > { %s190_s9 = sshll.u32 %s861_s30, 4  ;;  %s1156_s5 = sld [smem:[#allocation23_spill]]  ;;  %s191_s9 = int_to_ptr.vmem [resolvable:$true] %s190_s9 }
  0x1f   : > { %p605_p11 = pneg %p969_p10  ;;  %s862_s13 = smov 16  }
  0x20   : > { %s863_s14 = smov 1   ;;  %s864_s15 = smov [#allocation9]  }
  0x21   : > { %p606_p12 = pnand %p616_p9, %p605_p11  ;;  %s207_s16 = sshll.u32 %s864_s15, 4  ;;  %s208_s16 = int_to_ptr.vmem [resolvable:$true] %s207_s16 }
  0x22   : > { %229 = sbr.rel (%p969_p10) target bundleno = 239 (0xef), region = 40 }
  0x23   : > { %s188_s29 = sshll.u32 %s1155_s3, 4  ;;  %s189_s29 = int_to_ptr.hbm [resolvable:$true] %s188_s29 }
  0x24   : > { %s205_s12 = sshll.u32 %s1156_s5, 4  ;;  %s206_s12 = int_to_ptr.hbm [resolvable:$true] %s205_s12 }
  0x25   : > { %608 = dma.hbm_to_vmem [thread:$0]  (!%p606_p12), %s189_s29, 2048, %s191_s9, [#allocation7], %s862_s13, %s862_s13, %s863_s14  }
  0x26   : > { %611 = dma.hbm_to_vmem [thread:$0]  (!%p606_p12), %s206_s12, 256, %s208_s16, [#allocation10], %s862_s13, %s862_s13, %s863_s14  }
  0x27   : > { %831 = dma.done.wait (%p616_p9), [#allocation7], 2048  }
  0x28   : > { %833 = vsyncadd (%p616_p9), [#allocation7], 4294965248 }
  0x29   : > { %835 = dma.done.wait (%p616_p9), [#allocation10], 256  }
  0x2a   : > { %837 = vsyncadd (%p616_p9), [#allocation10], 4294967040  ;;  %s994_s19 = sshll.u32 %s941_s2, 3  ;;  %vm361_vm0 = vcmask 1040384   ;;  %vm363_vm1 = vcmask 1041408   ;;  %vm365_vm2 = vcmask 1042432  }
  0x2b   : > { %s261_s21 = sld [smem:[#allocation3 + %s994_s19]]  ;;  %s270_s22 = sadd.s32 1, %s994_s19  ;;  %vm367_vm3 = vcmask 1043456   ;;  %vm369_vm4 = vcmask 1044480   ;;  %vm371_vm5 = vcmask 1045504   ;;  %vm373_vm6 = vcmask 1046528  }
  0x2c   : > { %s264_s26 = sld [smem:[#allocation4 + %s994_s19]]  ;;  %s280_s27 = sadd.s32 2, %s994_s19  ;;  %v865_v49 = vmov 128.0  }
  0x2d   : > { %s267_s28 = sld [smem:[#allocation5 + %s994_s19]]  ;;  %s290_s29 = sadd.s32 3, %s994_s19  ;;  %684 = vrcp.f32 %v865_v49 }
  0x2e   : > { %s271_s30 = sld [smem:[#allocation3 + %s270_s22]]  ;;  %s1003_s9 = sadd.s32 4, %s994_s19 }
  0x2f   : > { %s274_s2 = sld [smem:[#allocation4 + %s270_s22]]  ;;  %s1006_s10 = sadd.s32 5, %s994_s19 }
  0x30   : > { %s277_s11 = sld [smem:[#allocation5 + %s270_s22]]  ;;  %s1009_s12 = sadd.s32 6, %s994_s19 }
  0x31   : > { %s281_s13 = sld [smem:[#allocation3 + %s280_s27]]  ;;  %s262_s23 = scalar_lea.vmem [#allocation6], %s261_s21 }
  0x32   : > { %s265_s16 = scalar_lea.vmem %s1130_s4, %s264_s26  ;;  %s284_s3 = sld [smem:[#allocation4 + %s280_s27]]  ;;  %v263_v0 = vld [vmem:[%s262_s23] sm:$0x1] }
  0x33   : > { %s287_s5 = sld [smem:[#allocation5 + %s280_s27]]  ;;  %v266_v1 = vld [vmem:[%s265_s16] sm:$0x1]  ;;  %s268_s20 = scalar_lea.vmem [#allocation9], %s267_s28  ;;  %v685_v50 = vpop.eup %684 }
  0x34   : > { %s1014_s17 = sld [smem:[#allocation3 + %s290_s29]]  ;;  %v269_v2 = vld [vmem:[%s268_s20] sm:$0x1]  ;;  %s272_s25 = scalar_lea.vmem [#allocation6], %s271_s30  ;;  %v437_v51 = vmul.f32 128.0, %v685_v50  ;;  %vm441_vm7 = vweird.f32 %v685_v50 }
  0x35   : > { %s275_s18 = scalar_lea.vmem %s1130_s4, %s274_s2  ;;  %s294_s7 = sld [smem:[#allocation4 + %s290_s29]]  ;;  %v661_v3 = vld [vmem:[%s272_s25] ss:$0 sm:$0xff] }
  0x36   : > { %s1019_s26 = sld [smem:[#allocation5 + %s290_s29]]  ;;  %v668_v4 = vld [vmem:[%s275_s18] ss:$0 sm:$0xff]  ;;  %s278_s23 = scalar_lea.vmem [#allocation9], %s277_s11  ;;  %v362_v7 = vsel %vm361_vm0, %v263_v0, %v661_v3  ;;  %v438_v52 = vsub.f32 1.0, %v437_v51 }
  0x37   : > { %s1022_s21 = sld [smem:[#allocation3 + %s1003_s9]]  ;;  %v675_v5 = vld [vmem:[%s278_s23] ss:$0 sm:$0xff]  ;;  %s282_s20 = scalar_lea.vmem [#allocation6], %s281_s13  ;;  %v396_v9 = vsel %vm361_vm0, %v266_v1, %v668_v4 }
  0x38   : > { %s285_s0 = scalar_lea.vmem %s1130_s4, %s284_s3  ;;  %s1028_s30 = sld [smem:[#allocation4 + %s1003_s9]]  ;;  %v662_v6 = vld [vmem:[%s282_s20] ss:$0 sm:$0xff]  ;;  %v424_v11 = vsel %vm361_vm0, %v269_v2, %v675_v5  ;;  %v439_v53 = vmul.f32 %v685_v50, %v438_v52 }
  0x39   : > { %s1032_s25 = sld [smem:[#allocation5 + %s1003_s9]]  ;;  %v669_v8 = vld [vmem:[%s285_s0] ss:$0 sm:$0xff]  ;;  %s288_s18 = scalar_lea.vmem [#allocation9], %s287_s5  ;;  %v364_v13 = vsel %vm363_vm1, %v362_v7, %v662_v6 }
  0x3a   : > { %s1036_s29 = sld [smem:[#allocation3 + %s1006_s10]]  ;;  %v676_v10 = vld [vmem:[%s288_s18] ss:$0 sm:$0xff]  ;;  %s292_s3 = scalar_lea.vmem [#allocation6], %s1014_s17  ;;  %v397_v15 = vsel %vm363_vm1, %v396_v9, %v669_v8  ;;  %v440_v54 = vadd.f32 %v685_v50, %v439_v53 }
  0x3b   : > { %s295_s9 = scalar_lea.vmem %s1130_s4, %s294_s7  ;;  %s1044_s13 = sld [smem:[#allocation4 + %s1006_s10]]  ;;  %v663_v12 = vld [vmem:[%s292_s3] ss:$0 sm:$0xff]  ;;  %v425_v17 = vsel %vm363_vm1, %v424_v11, %v676_v10 }
  0x3c   : > { %s1048_s5 = sld [smem:[#allocation5 + %s1006_s10]]  ;;  %v670_v14 = vld [vmem:[%s295_s9] ss:$0 sm:$0xff]  ;;  %s298_s14 = scalar_lea.vmem [#allocation9], %s1019_s26  ;;  %v366_v19 = vsel %vm365_vm2, %v364_v13, %v663_v12  ;;  %v442_v56 = vsel %vm441_vm7, %v685_v50, %v440_v54 }
  0x3d   : > { %s1053_s17 = sld [smem:[#allocation3 + %s1009_s12]]  ;;  %v677_v16 = vld [vmem:[%s298_s14] ss:$0 sm:$0xff]  ;;  %s302_s7 = scalar_lea.vmem [#allocation6], %s1022_s21  ;;  %v398_v21 = vsel %vm365_vm2, %v397_v15, %v670_v14 }
  0x3e   : > { %s305_s22 = scalar_lea.vmem %s1130_s4, %s1028_s30  ;;  %s1062_s10 = sld [smem:[#allocation4 + %s1009_s12]]  ;;  %v664_v18 = vld [vmem:[%s302_s7] ss:$0 sm:$0xff]  ;;  %v426_v23 = vsel %vm365_vm2, %v425_v17, %v677_v16 }
  0x3f   : > { %s327_s23 = sld [smem:[#allocation5 + %s1009_s12]]  ;;  %v671_v20 = vld [vmem:[%s305_s22] ss:$0 sm:$0xff]  ;;  %s308_s26 = scalar_lea.vmem [#allocation9], %s1032_s25  ;;  %v368_v25 = vsel %vm367_vm3, %v366_v19, %v664_v18 }
  0x40   : > { %s330_s20 = sadd.s32 7, %s994_s19  ;;  %v678_v22 = vld [vmem:[%s308_s26] ss:$0 sm:$0xff]  ;;  %s312_s21 = scalar_lea.vmem [#allocation6], %s1036_s29  ;;  %v399_v27 = vsel %vm367_vm3, %v398_v21, %v671_v20 }
  0x41   : > { %s315_s0 = scalar_lea.vmem %s1130_s4, %s1044_s13  ;;  %s331_s30 = sld [smem:[#allocation3 + %s330_s20]]  ;;  %v665_v24 = vld [vmem:[%s312_s21] ss:$0 sm:$0xff]  ;;  %v427_v29 = vsel %vm367_vm3, %v426_v23, %v678_v22 }
  0x42   : > { %s334_s12 = sld [smem:[#allocation4 + %s330_s20]]  ;;  %v672_v26 = vld [vmem:[%s315_s0] ss:$0 sm:$0xff]  ;;  %s318_s25 = scalar_lea.vmem [#allocation9], %s1048_s5  ;;  %v370_v31 = vsel %vm369_vm4, %v368_v25, %v665_v24 }
  0x43   : > { %s337_s18 = sld [smem:[#allocation5 + %s330_s20]]  ;;  %v679_v28 = vld [vmem:[%s318_s25] ss:$0 sm:$0xff]  ;;  %s322_s3 = scalar_lea.vmem [#allocation6], %s1053_s17  ;;  %v400_v33 = vsel %vm369_vm4, %v399_v27, %v672_v26 }
  0x44   : > { %s325_s11 = scalar_lea.vmem %s1130_s4, %s1062_s10  ;;  %v666_v30 = vld [vmem:[%s322_s3] ss:$0 sm:$0xff]  ;;  %v428_v35 = vsel %vm369_vm4, %v427_v29, %v679_v28  ;;  %s255_s15 = sand.u32 1, %s848_s1  }
  0x45   : > { %v673_v32 = vld [vmem:[%s325_s11] ss:$0 sm:$0xff]  ;;  %s328_s9 = scalar_lea.vmem [#allocation9], %s327_s23  ;;  %v372_v36 = vsel %vm371_vm5, %v370_v31, %v666_v30  ;;  %s589_s16 = sshll.u32 %s255_s15, 3 }
  0x46   : > { %v680_v34 = vld [vmem:[%s328_s9] ss:$0 sm:$0xff]  ;;  %v401_v38 = vsel %vm371_vm5, %v400_v33, %v673_v32  ;;  %s484_s20 = scalar_lea.hbm %s1134_s8, %s994_s19  ;;  %s1157_s28 = sld [smem:[#allocation24_spill]] }
  0x47   : > { %s332_s13 = scalar_lea.vmem [#allocation6], %s331_s30  ;;  %v429_v40 = vsel %vm371_vm5, %v428_v35, %v680_v34  ;;  %v682_v7 = vld [vmem:[%s1132_s6] ss:$0 sm:$0xff]  ;;  %s257_s0 = scalar_lea.vmem [#allocation11], %s589_s16 }
  0x48   : > { %s335_s17 = scalar_lea.vmem %s1130_s4, %s334_s12  ;;  %v667_v37 = vld [vmem:[%s332_s13] ss:$0 sm:$0xff]  ;;  %s486_s30 = sshll.u32 %s257_s0, 4  ;;  %s487_s30 = int_to_ptr.vmem [resolvable:$true] %s486_s30 }
  0x49   : > { %v674_v39 = vld [vmem:[%s335_s17] ss:$0 sm:$0xff]  ;;  %s338_s7 = scalar_lea.vmem [#allocation9], %s337_s18  ;;  %v374_v41 = vsel %vm373_vm6, %v372_v36, %v667_v37  ;;  %s488_s12 = sshll.u32 %s484_s20, 4  ;;  %s489_s12 = int_to_ptr.hbm [resolvable:$true] %s488_s12 }
  0x4a   : > { %v681_v42 = vld [vmem:[%s338_s7] ss:$0 sm:$0xff]  ;;  %v402_v43 = vsel %vm373_vm6, %v401_v38, %v674_v39  ;;  %v431_v44 = vmul.f32 11.313708, %v374_v41  ;;  %s474_s25 = scalar_lea.sflag [#allocation8], %s255_s15  ;;  %s798_s18 = sshra.s32 %s489_s12, 4  ;;  %s799_s18 = int_to_ptr.hbm [resolvable:$true] %s798_s18 }
  0x4b   : > { %v430_v45 = vsel %vm373_vm6, %v429_v40, %v681_v42  ;;  %s800_s3 = scalar_lea.hbm %s799_s18, 8  ;;  %s804_s2 = scalar_lea.hbm %s1134_s8, 16 }
  0x4c   : > { %v432_v46 = vadd.f32 %v431_v44, %v402_v43  ;;  %v683_v10 = vld [vmem:[%s1157_s28] ss:$0 sm:$0xff]  ;;  %p801_p13 = scmp.ne.s32.totalorder %s799_s18, %s800_s3  ;;  %p805_p2 = scmp.lt.s32.totalorder %s799_s18, %s1134_s8 }
  0x4d   : > { %p806_p3 = scmp.lt.s32.totalorder %s804_s2, %s800_s3 }
  0x4e   : > { %v433_v47 = vadd.f32 %v432_v46, %v430_v45  ;;  %p802_p0 = pnand %p801_p13, %p958_p5 }
  0x4f   : > { %p807_p4 = por %p806_p3, %p805_p2 }
  0x50   : > { %434 = vadd.xlane.f32.xlu0 %v433_v47  ;;  %v444_v48 = vmul.f32 %v433_v47, %v433_v47  ;;  %p803_p1 = pneg %p802_p0 }
  0x52   : > { %p808_p7 = pnand %p807_p4, %p803_p1 }
  0x58   : > { %445 = vadd.xlane.f32.xlu0 %v444_v48 }
  0xc3   : > { %v435_v55 = vpop.xlane.xlu0 %434 }
  0xc4   : > { %v443_v57 = vmul.f32 %v442_v56, %v435_v55 }
  0xc6   : > { %v448_v59 = vmul.f32 %v443_v57, %v443_v57  ;;  %v451_v6 = vsub.f32 %v433_v47, %v443_v57 }
  0xcb   : > { %v446_v58 = vpop.xlane.xlu0 %445 }
  0xcc   : > { %v447_v60 = vmul.f32 %v446_v58, %v442_v56 }
  0xce   : > { %v449_v61 = vsub.f32 %v447_v60, %v448_v59 }
  0xd0   : > { %v450_v62 = vmax.f32 %v449_v61, 0.0 }
  0xd2   : > { %v452_v63 = vadd.f32 1e-05, %v450_v62 }
  0xd4   : > { %686 = vrsqrt.f32 %v452_v63  ;;  %vm459_vm9 = vweird.f32 %v452_v63 }
  0xda   : > { %v687_v0 = vpop.eup %686 }
  0xdb   : > { %v454_v1 = vmul.f32 %v687_v0, %v452_v63  ;;  %vm460_vm8 = vweird.f32 %v687_v0 }
  0xdc   : > { %vm461_vm10 = vmor %vm459_vm9, %vm460_vm8 }
  0xdd   : > { %v455_v2 = vmul.f32 %v687_v0, %v454_v1 }
  0xdf   : > { %v456_v3 = vmul.f32 0.5, %v455_v2 }
  0xe1   : > { %v457_v4 = vsub.f32 1.5, %v456_v3 }
  0xe3   : > { %v458_v5 = vmul.f32 %v687_v0, %v457_v4 }
  0xe5   : > { %v462_v8 = vsel %vm461_vm10, %v687_v0, %v458_v5 }
  0xe6   : > { %v463_v9 = vmul.f32 %v462_v8, %v451_v6 }
  0xe8   : > { %v467_v11 = vmul.f32 %v682_v7, %v463_v9 }
  0xea   : > { %v471_v12 = vadd.f32 %v683_v10, %v467_v11 }
  0xec   : > { %472 = vst [vmem:[%s257_s0] sm:$0xff] %v471_v12 }
  0xed   : > { %811 = shalt.err (!%p808_p7)
}
  0xee   : > { %603 = dma.vmem_to_hbm [thread:$0]  (%p958_p5), %s487_s30, 128, %s489_s12, %s474_s25  }
  0xef PF: > { %s1158_s13 = sld [smem:[#allocation18_spill]] }
  0xf0   : > { %s1159_s5 = sld [smem:[#allocation16_spill]] }
  0xf5   : > { %p620_p8 = scmp.ge.s32.totalorder %s1158_s13, 2 }
  0xf6   : > { %s500_s17 = sand.u32 1, %s1159_s5  }
  0xf7   : > { %p613_p9 = pnand %p620_p8, %p962_p6  ;;  %s501_s7 = scalar_lea.sflag [#allocation8], %s500_s17 }
  0xf9   : > { %p614_p10 = pneg %p613_p9 }
  0xfb   : > { %839 = dma.done.wait (%p614_p10), %s501_s7, 128  }
  0xfc   : > { %841 = vsyncadd (%p614_p10), %s501_s7, 4294967168  ;;  %s1161_s18 = sld [smem:[#allocation19_spill]]  ;;  %s1164_s0 = smov %s848_s1 }
  0xfd   : > { %s1162_s15 = sld [smem:[#allocation17_spill]] }
  0xfe   : > { %s1163_s17 = sld [smem:[#allocation20_spill]] }
 0x102   : > { %p38_p11 = scmp.ge.s32.totalorder %s1161_s18, 4  }
 0x103   : > { %s1165_s1 = smov %s1162_s15 }
 0x104   :  { %40 = sbr.rel (!%p38_p11) target bundleno = 16 (0x10), region = 105 }
 0x109   :  { %507 = vsyncpa [#allocation7], 1 }
 0x10a   :  { %509 = vsyncpa [#allocation7 + $0x1], 1 }
 0x10b   :  { %510 = vsyncpa [#allocation10], 1 }
 0x10c   :  { %511 = vsyncpa [#allocation8], 1 }
 0x10d   :  { %513 = vsyncpa [#allocation8 + $0x1], 1 }

</bundles_post_ra>
